<compile_context>
chip_gen: v7x
topology: tpu7x:2x2x1
jax: 0.10.0
libtpu: 0.0.40
codegen_flags: <defaults>
</compile_context>

<pallas_src>
import functools

import jax
import jax.numpy as jnp
from jax.experimental import pallas as pl
from jax.experimental.pallas import tpu as pltpu

_LANE = 128
_SUBLANE = 8


def _round_up(x, m):
    return ((x + m - 1) // m) * m


def _maybe_pad2d(x, rows, cols):
    if x.shape == (rows, cols):
        return x
    return jnp.pad(x, ((0, rows - x.shape[0]), (0, cols - x.shape[1])))


def _maybe_cast(x, dtype):
    return x if x.dtype == dtype else x.astype(dtype)


def _vmem_limit_bytes():
    """Chip-aware scoped-VMEM budget: ~3/4 of physical VMEM, capped at 96 MiB.

    v5e/v6e (128 MiB) -> 96 MiB; v7x (64 MiB) -> 48 MiB; fallback (unknown) -> 48 MiB.
    """
    cap = 64 * 1024 * 1024
    try:
        info = pltpu.get_tpu_info()
        cap = int(getattr(info, "vmem_capacity_bytes", cap))
    except Exception:
        pass
    return min((cap // 4) * 3, 96 * 1024 * 1024)


def _sage_conv_kernel(a_ref, hsrc_ref, hdst_ref, ws_ref, wn_ref, b_ref, o_ref,
                      acc_ref, *, relu):
    """Fused, tiled SAGEConv('mean') layer.

    grid = (i: dst tiles [parallel], k: src tiles [arbitrary reduction])
      acc    += A[i,k] @ h[k]                              (bf16 MXU, f32 accumulation)
      out[i]  = h_dst[i] @ W_self + acc @ W_neigh + bias   (two accumulated dots, no concat)
    """
    k = pl.program_id(1)

    @pl.when(k == 0)
    def _init():
        acc_ref[...] = jnp.zeros_like(acc_ref)

    # mean-neighbor aggregation (A is already row-normalized by in-degree)
    acc_ref[...] += jnp.dot(a_ref[...], hsrc_ref[...],
                            preferred_element_type=jnp.float32)

    @pl.when(k == pl.num_programs(1) - 1)
    def _finalize():
        out = jnp.dot(hdst_ref[...], ws_ref[...],
                      preferred_element_type=jnp.float32)
        out = out + jnp.dot(acc_ref[...].astype(wn_ref.dtype), wn_ref[...],
                            preferred_element_type=jnp.float32)
        out = out + b_ref[...]
        if relu:
            out = jnp.maximum(out, 0.0)
        o_ref[...] = out.astype(o_ref.dtype)


def sage_conv(A, h, w_self, w_neigh, bias, *, relu, out_dtype=jnp.bfloat16,
              tile_dst=512, tile_src=1024):
    """One SAGEConv('mean') layer: tiled, pipelined Pallas kernel.

    A : (n_dst, n_src) dense row-normalized aggregation matrix (any float dtype);
        its pad/convert fuses into the pallas_call via allow_input_fusion.
    h : (rows, cols) source features, possibly already padded bf16 from a previous
        layer (rows >= n_src, cols >= d_in). Values beyond the valid region are
        harmless: padded A columns and padded W rows are exactly zero.
    Returns the PADDED output (n_dst_p, d_out_p) in `out_dtype`; slice at the
    network boundary only.
    """
    n_dst, n_src = A.shape
    d_in, d_out = w_self.shape
    assert w_neigh.shape == (d_in, d_out) and bias.shape == (d_out,)
    assert h.shape[0] >= n_src and h.shape[1] >= d_in

    # lane-dense feature dims (128; do NOT bump to 256 while the kernel is A-stream bound)
    d_in_p = _round_up(max(d_in, h.shape[1]), _LANE)
    d_out_p = _round_up(d_out, _LANE)

    # src (reduction) tiling
    tk = min(tile_src, _round_up(n_src, _LANE))
    n_src_p = _round_up(n_src, tk)

    # dst (parallel) tiling; guarantee >= 2 grid steps when possible so the v7x megacore
    # can shard the "parallel" axis across both TensorCores.
    n_dst_lane = _round_up(n_dst, _LANE)
    tm = min(tile_dst, n_dst_lane)
    if n_dst_lane // tm < 2 and n_dst_lane >= 2 * _SUBLANE:
        tm = max(_SUBLANE, _round_up(n_dst_lane // 2, _SUBLANE))
    n_dst_p = _round_up(n_dst, tm)

    # h must cover both the k-axis (src) tiles and the i-axis (dst, self-path) tiles
    n_h_rows = max(n_src_p, n_dst_p)

    # Zero padding keeps the math exact: padded A columns and padded W rows contribute 0;
    # padded dst rows / out columns are sliced off at the network boundary. Pads/casts are
    # skipped when already satisfied and otherwise fused into the kernel operands.
    a_p = _maybe_cast(_maybe_pad2d(A, n_dst_p, n_src_p), jnp.bfloat16)
    h_p = _maybe_cast(_maybe_pad2d(h, n_h_rows, d_in_p), jnp.bfloat16)
    ws_p = _maybe_cast(_maybe_pad2d(w_self, d_in_p, d_out_p), jnp.bfloat16)
    wn_p = _maybe_cast(_maybe_pad2d(w_neigh, d_in_p, d_out_p), jnp.bfloat16)
    b_p = jnp.pad(bias, (0, d_out_p - d_out)).reshape(1, d_out_p).astype(jnp.float32)

    grid = (n_dst_p // tm, n_src_p // tk)
    kernel = functools.partial(_sage_conv_kernel, relu=relu)

    return pl.pallas_call(
        kernel,
        out_shape=jax.ShapeDtypeStruct((n_dst_p, d_out_p), out_dtype),
        grid_spec=pltpu.PrefetchScalarGridSpec(
            num_scalar_prefetch=0,
            grid=grid,
            in_specs=[
                pl.BlockSpec((tm, tk), lambda i, k: (i, k)),             # A tile (dominant stream)
                pl.BlockSpec((tk, d_in_p), lambda i, k: (k, 0)),         # h src tile (reduction)
                pl.BlockSpec((tm, d_in_p), lambda i, k: (i, 0)),         # h dst tile (self path)
                pl.BlockSpec((d_in_p, d_out_p), lambda i, k: (0, 0)),    # W_self (resident)
                pl.BlockSpec((d_in_p, d_out_p), lambda i, k: (0, 0)),    # W_neigh (resident)
                pl.BlockSpec((1, d_out_p), lambda i, k: (0, 0)),         # bias (resident)
            ],
            out_specs=pl.BlockSpec((tm, d_out_p), lambda i, k: (i, 0)),
            scratch_shapes=[pltpu.VMEM((tm, d_in_p), jnp.float32)],
        ),
        compiler_params=pltpu.CompilerParams(
            dimension_semantics=("parallel", "arbitrary"),
            vmem_limit_bytes=_vmem_limit_bytes(),
            allow_input_fusion=[True] * 6,
        ),
    )(a_p, h_p, h_p, ws_p, wn_p, b_p)


def sage_forward(blocks, x, params):
    """Mirrors SAGE.forward: per-layer SAGEConv, ReLU (fused in kernel) + Dropout (eval).

    Intermediate activations stay padded & bf16 between layers (no slice / re-pad / re-cast
    round trips); only the final layer emits f32 and only the final result is sliced.
    """
    h = x
    n_layers = len(params)
    for l, (A, (w_self, w_neigh, b)) in enumerate(zip(blocks, params)):
        last = l == n_layers - 1
        h = sage_conv(A, h, w_self, w_neigh, b, relu=not last,
                      out_dtype=jnp.float32 if last else jnp.bfloat16)
        # dropout: identity in eval mode
    n_dst = blocks[-1].shape[0]
    d_out = params[-1][0].shape[1]
    return h[:n_dst, :d_out]


def _make_block(key, n_dst, n_src):
    """Dense row-normalized mean-aggregation matrix for a synthetic bipartite block."""
    adj = jax.random.bernoulli(key, p=0.4, shape=(n_dst, n_src)).astype(jnp.float32)
    # every dst node sees itself (DGL blocks include dst nodes in the src set; n_dst <= n_src)
    adj = adj.at[jnp.arange(n_dst), jnp.arange(n_dst)].set(1.0)
    deg = jnp.maximum(adj.sum(axis=1, keepdims=True), 1.0)
    return adj / deg


def _reference_forward(blocks, x, params):
    """Plain-JAX f32 reference for correctness checking."""
    h = x
    for l, (A, (w_self, w_neigh, b)) in enumerate(zip(blocks, params)):
        n_dst = A.shape[0]
        out = h[:n_dst] @ w_self + (A @ h) @ w_neigh + b[None, :]
        if l != len(params) - 1:
            out = jnp.maximum(out, 0.0)
        h = out
    return h


if __name__ == "__main__":
    key = jax.random.PRNGKey(0)

    in_size, hid_size, out_size = 32, 32, 16
    n_src1, n_dst1 = 64, 32        # layer-1 block
    n_src2, n_dst2 = n_dst1, 16    # layer-2 block (src of layer 2 == dst of layer 1)

    k_feat, k_b1, k_b2, k_w1s, k_w1n, k_w2s, k_w2n = jax.random.split(key, 7)

    # node features
    x = jax.random.normal(k_feat, (n_src1, in_size), dtype=jnp.float32)

    # synthetic graph blocks (dense mean-aggregation matrices)
    blocks = [
        _make_block(k_b1, n_dst1, n_src1),
        _make_block(k_b2, n_dst2, n_src2),
    ]

    # deterministic parameter init (Linear weights stored as [in, out] == W^T)
    def init_linear(kw, d_in, d_out):
        scale = 1.0 / jnp.sqrt(jnp.float32(d_in))
        return jax.random.uniform(kw, (d_in, d_out), jnp.float32, -scale, scale)

    params = [
        (init_linear(k_w1s, in_size, hid_size),
         init_linear(k_w1n, in_size, hid_size),
         jnp.zeros((hid_size,), jnp.float32)),
        (init_linear(k_w2s, hid_size, out_size),
         init_linear(k_w2n, hid_size, out_size),
         jnp.zeros((out_size,), jnp.float32)),
    ]

    out = jax.jit(sage_forward)(blocks, x, params)
    out = jax.block_until_ready(out)
    assert out.shape == (n_dst2, out_size), out.shape

    ref = _reference_forward(blocks, x, params)
    # bf16 MXU operands / bf16 inter-layer activation (f32 accumulation) -> loose tolerance
    assert jnp.allclose(out, ref, atol=5e-2, rtol=5e-2), "mismatch vs reference"

    print("KERNEL_OK")
</pallas_src>

<mosaic_0001>
module attributes {stable_mosaic.version = 11 : i64} {
  func.func @_sage_conv_kernel(%arg0: i32, %arg1: i32, %arg2: memref<64x128xbf16, #tpu.memory_space<vmem>>, %arg3: memref<128x128xbf16, #tpu.memory_space<vmem>>, %arg4: memref<64x128xbf16, #tpu.memory_space<vmem>>, %arg5: memref<128x128xbf16, #tpu.memory_space<vmem>>, %arg6: memref<128x128xbf16, #tpu.memory_space<vmem>>, %arg7: memref<1x128xf32, #tpu.memory_space<vmem>>, %arg8: memref<64x128xbf16, #tpu.memory_space<vmem>>, %arg9: memref<64x128xf32, #tpu.memory_space<vmem>>) attributes {dimension_semantics = [#tpu.dimension_semantics<parallel>, #tpu.dimension_semantics<arbitrary>], iteration_bounds = array<i64: 1, 1>, scalar_prefetch = 0 : i64, scratch_operands = 1 : i64, tpu.core_type = #tpu.core_type<tc>, window_params = [{transform_indices = @transform_0, window_bounds = array<i64: 64, 128>}, {transform_indices = @transform_1, window_bounds = array<i64: 128, 128>}, {transform_indices = @transform_2, window_bounds = array<i64: 64, 128>}, {pipeline_mode = #tpu.pipeline_mode<synchronous>, transform_indices = @transform_3, window_bounds = array<i64: 128, 128>}, {pipeline_mode = #tpu.pipeline_mode<synchronous>, transform_indices = @transform_4, window_bounds = array<i64: 128, 128>}, {pipeline_mode = #tpu.pipeline_mode<synchronous>, transform_indices = @transform_5, window_bounds = array<i64: 1, 128>}, {transform_indices = @transform_6, window_bounds = array<i64: 64, 128>}]} {
    %c0_i32 = arith.constant 0 : i32
    %0 = arith.cmpi eq, %arg1, %c0_i32 : i32
    %1 = arith.extui %0 : i1 to i32
    %c0_i32_0 = arith.constant 0 : i32
    %2 = arith.cmpi ne, %1, %c0_i32_0 : i32
    scf.if %2 {
      %cst_10 = arith.constant 0.000000e+00 : f32
      %12 = vector.broadcast %cst_10 : f32 to vector<64x128xf32>
      %c0_11 = arith.constant 0 : index
      %c0_12 = arith.constant 0 : index
      %13 = vector.load %arg9[%c0_11, %c0_12] : memref<64x128xf32, #tpu.memory_space<vmem>>, vector<64x128xf32>
      tpu.vector_store %arg9[%c0_11, %c0_12], %12 {strides = array<i32>} : memref<64x128xf32, #tpu.memory_space<vmem>>, vector<64x128xf32>,
    } else {
    }
    %c0 = arith.constant 0 : index
    %c0_1 = arith.constant 0 : index
    %3 = vector.load %arg9[%c0, %c0_1] : memref<64x128xf32, #tpu.memory_space<vmem>>, vector<64x128xf32>
    %c0_2 = arith.constant 0 : index
    %c0_3 = arith.constant 0 : index
    %4 = vector.load %arg2[%c0_2, %c0_3] : memref<64x128xbf16, #tpu.memory_space<vmem>>, vector<64x128xbf16>
    %c0_4 = arith.constant 0 : index
    %c0_5 = arith.constant 0 : index
    %5 = vector.load %arg3[%c0_4, %c0_5] : memref<128x128xbf16, #tpu.memory_space<vmem>>, vector<128x128xbf16>
    %cst = arith.constant dense<0.000000e+00> : vector<64x128xf32>
    %6 = tpu.matmul %4, %5, %cst {dimension_numbers = #tpu.dot_dimension_numbers<[1], [0], [0], [1], [0, 0, 1, 1], [], []>} : vector<64x128xbf16>, vector<128x128xbf16>, vector<64x128xf32> -> vector<64x128xf32>
    %7 = arith.addf %3, %6 : vector<64x128xf32>
    %c0_6 = arith.constant 0 : index
    %c0_7 = arith.constant 0 : index
    %8 = vector.load %arg9[%c0_6, %c0_7] : memref<64x128xf32, #tpu.memory_space<vmem>>, vector<64x128xf32>
    tpu.vector_store %arg9[%c0_6, %c0_7], %7 {strides = array<i32>} : memref<64x128xf32, #tpu.memory_space<vmem>>, vector<64x128xf32>,
    %c0_i32_8 = arith.constant 0 : i32
    %9 = arith.cmpi eq, %arg1, %c0_i32_8 : i32
    %10 = arith.extui %9 : i1 to i32
    %c0_i32_9 = arith.constant 0 : i32
    %11 = arith.cmpi ne, %10, %c0_i32_9 : i32
    scf.if %11 {
      %c0_10 = arith.constant 0 : index
      %c0_11 = arith.constant 0 : index
      %12 = vector.load %arg4[%c0_10, %c0_11] : memref<64x128xbf16, #tpu.memory_space<vmem>>, vector<64x128xbf16>
      %c0_12 = arith.constant 0 : index
      %c0_13 = arith.constant 0 : index
      %13 = vector.load %arg5[%c0_12, %c0_13] : memref<128x128xbf16, #tpu.memory_space<vmem>>, vector<128x128xbf16>
      %cst_14 = arith.constant dense<0.000000e+00> : vector<64x128xf32>
      %14 = tpu.matmul %12, %13, %cst_14 {dimension_numbers = #tpu.dot_dimension_numbers<[1], [0], [0], [1], [0, 0, 1, 1], [], []>} : vector<64x128xbf16>, vector<128x128xbf16>, vector<64x128xf32> -> vector<64x128xf32>
      %c0_15 = arith.constant 0 : index
      %c0_16 = arith.constant 0 : index
      %15 = vector.load %arg9[%c0_15, %c0_16] : memref<64x128xf32, #tpu.memory_space<vmem>>, vector<64x128xf32>
      %16 = arith.truncf %15 : vector<64x128xf32> to vector<64x128xbf16>
      %c0_17 = arith.constant 0 : index
      %c0_18 = arith.constant 0 : index
      %17 = vector.load %arg6[%c0_17, %c0_18] : memref<128x128xbf16, #tpu.memory_space<vmem>>, vector<128x128xbf16>
      %cst_19 = arith.constant dense<0.000000e+00> : vector<64x128xf32>
      %18 = tpu.matmul %16, %17, %cst_19 {dimension_numbers = #tpu.dot_dimension_numbers<[1], [0], [0], [1], [0, 0, 1, 1], [], []>} : vector<64x128xbf16>, vector<128x128xbf16>, vector<64x128xf32> -> vector<64x128xf32>
      %19 = arith.addf %14, %18 : vector<64x128xf32>
      %c0_20 = arith.constant 0 : index
      %c0_21 = arith.constant 0 : index
      %20 = vector.load %arg7[%c0_20, %c0_21] : memref<1x128xf32, #tpu.memory_space<vmem>>, vector<1x128xf32>
      %21 = vector.broadcast %20 : vector<1x128xf32> to vector<64x128xf32>
      %22 = arith.addf %19, %21 : vector<64x128xf32>
      %cst_22 = arith.constant 0.000000e+00 : f32
      %23 = vector.broadcast %cst_22 : f32 to vector<64x128xf32>
      %24 = arith.maximumf %22, %23 : vector<64x128xf32>
      %25 = arith.truncf %24 : vector<64x128xf32> to vector<64x128xbf16>
      %c0_23 = arith.constant 0 : index
      %c0_24 = arith.constant 0 : index
      %26 = vector.load %arg8[%c0_23, %c0_24] : memref<64x128xbf16, #tpu.memory_space<vmem>>, vector<64x128xbf16>
      tpu.vector_store %arg8[%c0_23, %c0_24], %25 {strides = array<i32>} : memref<64x128xbf16, #tpu.memory_space<vmem>>, vector<64x128xbf16>,
    } else {
    }
    return
  }
  func.func @transform_0(%arg0: i32, %arg1: i32) -> (i32, i32) {
    %c0_i32 = arith.constant 0 : i32
    return %arg0, %arg1 : i32, i32
  }
  func.func @transform_1(%arg0: i32, %arg1: i32) -> (i32, i32) {
    %c0_i32 = arith.constant 0 : i32
    %c0_i32_0 = arith.constant 0 : i32
    return %arg1, %c0_i32 : i32, i32
  }
  func.func @transform_2(%arg0: i32, %arg1: i32) -> (i32, i32) {
    %c0_i32 = arith.constant 0 : i32
    %c0_i32_0 = arith.constant 0 : i32
    return %arg0, %c0_i32 : i32, i32
  }
  func.func @transform_3(%arg0: i32, %arg1: i32) -> (i32, i32) {
    %c0_i32 = arith.constant 0 : i32
    %c0_i32_0 = arith.constant 0 : i32
    %c0_i32_1 = arith.constant 0 : i32
    return %c0_i32, %c0_i32_0 : i32, i32
  }
  func.func @transform_4(%arg0: i32, %arg1: i32) -> (i32, i32) {
    %c0_i32 = arith.constant 0 : i32
    %c0_i32_0 = arith.constant 0 : i32
    %c0_i32_1 = arith.constant 0 : i32
    return %c0_i32, %c0_i32_0 : i32, i32
  }
  func.func @transform_5(%arg0: i32, %arg1: i32) -> (i32, i32) {
    %c0_i32 = arith.constant 0 : i32
    %c0_i32_0 = arith.constant 0 : i32
    %c0_i32_1 = arith.constant 0 : i32
    return %c0_i32, %c0_i32_0 : i32, i32
  }
  func.func @transform_6(%arg0: i32, %arg1: i32) -> (i32, i32) {
    %c0_i32 = arith.constant 0 : i32
    %c0_i32_0 = arith.constant 0 : i32
    return %arg0, %c0_i32 : i32, i32
  }
}

module attributes {stable_mosaic.version = 11 : i64} {
  func.func @_sage_conv_kernel(%arg0: i32, %arg1: i32, %arg2: memref<64x128xbf16, #tpu.memory_space<vmem>>, %arg3: memref<128x128xbf16, #tpu.memory_space<vmem>>, %arg4: memref<64x128xbf16, #tpu.memory_space<vmem>>, %arg5: memref<128x128xbf16, #tpu.memory_space<vmem>>, %arg6: memref<128x128xbf16, #tpu.memory_space<vmem>>, %arg7: memref<1x128xf32, #tpu.memory_space<vmem>>, %arg8: memref<64x128xf32, #tpu.memory_space<vmem>>, %arg9: memref<64x128xf32, #tpu.memory_space<vmem>>) attributes {dimension_semantics = [#tpu.dimension_semantics<parallel>, #tpu.dimension_semantics<arbitrary>], iteration_bounds = array<i64: 1, 1>, scalar_prefetch = 0 : i64, scratch_operands = 1 : i64, tpu.core_type = #tpu.core_type<tc>, window_params = [{transform_indices = @transform_0, window_bounds = array<i64: 64, 128>}, {transform_indices = @transform_1, window_bounds = array<i64: 128, 128>}, {transform_indices = @transform_2, window_bounds = array<i64: 64, 128>}, {pipeline_mode = #tpu.pipeline_mode<synchronous>, transform_indices = @transform_3, window_bounds = array<i64: 128, 128>}, {pipeline_mode = #tpu.pipeline_mode<synchronous>, transform_indices = @transform_4, window_bounds = array<i64: 128, 128>}, {pipeline_mode = #tpu.pipeline_mode<synchronous>, transform_indices = @transform_5, window_bounds = array<i64: 1, 128>}, {transform_indices = @transform_6, window_bounds = array<i64: 64, 128>}]} {
    %c0_i32 = arith.constant 0 : i32
    %0 = arith.cmpi eq, %arg1, %c0_i32 : i32
    %1 = arith.extui %0 : i1 to i32
    %c0_i32_0 = arith.constant 0 : i32
    %2 = arith.cmpi ne, %1, %c0_i32_0 : i32
    scf.if %2 {
      %cst_10 = arith.constant 0.000000e+00 : f32
      %12 = vector.broadcast %cst_10 : f32 to vector<64x128xf32>
      %c0_11 = arith.constant 0 : index
      %c0_12 = arith.constant 0 : index
      %13 = vector.load %arg9[%c0_11, %c0_12] : memref<64x128xf32, #tpu.memory_space<vmem>>, vector<64x128xf32>
      tpu.vector_store %arg9[%c0_11, %c0_12], %12 {strides = array<i32>} : memref<64x128xf32, #tpu.memory_space<vmem>>, vector<64x128xf32>,
    } else {
    }
    %c0 = arith.constant 0 : index
    %c0_1 = arith.constant 0 : index
    %3 = vector.load %arg9[%c0, %c0_1] : memref<64x128xf32, #tpu.memory_space<vmem>>, vector<64x128xf32>
    %c0_2 = arith.constant 0 : index
    %c0_3 = arith.constant 0 : index
    %4 = vector.load %arg2[%c0_2, %c0_3] : memref<64x128xbf16, #tpu.memory_space<vmem>>, vector<64x128xbf16>
    %c0_4 = arith.constant 0 : index
    %c0_5 = arith.constant 0 : index
    %5 = vector.load %arg3[%c0_4, %c0_5] : memref<128x128xbf16, #tpu.memory_space<vmem>>, vector<128x128xbf16>
    %cst = arith.constant dense<0.000000e+00> : vector<64x128xf32>
    %6 = tpu.matmul %4, %5, %cst {dimension_numbers = #tpu.dot_dimension_numbers<[1], [0], [0], [1], [0, 0, 1, 1], [], []>} : vector<64x128xbf16>, vector<128x128xbf16>, vector<64x128xf32> -> vector<64x128xf32>
    %7 = arith.addf %3, %6 : vector<64x128xf32>
    %c0_6 = arith.constant 0 : index
    %c0_7 = arith.constant 0 : index
    %8 = vector.load %arg9[%c0_6, %c0_7] : memref<64x128xf32, #tpu.memory_space<vmem>>, vector<64x128xf32>
    tpu.vector_store %arg9[%c0_6, %c0_7], %7 {strides = array<i32>} : memref<64x128xf32, #tpu.memory_space<vmem>>, vector<64x128xf32>,
    %c0_i32_8 = arith.constant 0 : i32
    %9 = arith.cmpi eq, %arg1, %c0_i32_8 : i32
    %10 = arith.extui %9 : i1 to i32
    %c0_i32_9 = arith.constant 0 : i32
    %11 = arith.cmpi ne, %10, %c0_i32_9 : i32
    scf.if %11 {
      %c0_10 = arith.constant 0 : index
      %c0_11 = arith.constant 0 : index
      %12 = vector.load %arg4[%c0_10, %c0_11] : memref<64x128xbf16, #tpu.memory_space<vmem>>, vector<64x128xbf16>
      %c0_12 = arith.constant 0 : index
      %c0_13 = arith.constant 0 : index
      %13 = vector.load %arg5[%c0_12, %c0_13] : memref<128x128xbf16, #tpu.memory_space<vmem>>, vector<128x128xbf16>
      %cst_14 = arith.constant dense<0.000000e+00> : vector<64x128xf32>
      %14 = tpu.matmul %12, %13, %cst_14 {dimension_numbers = #tpu.dot_dimension_numbers<[1], [0], [0], [1], [0, 0, 1, 1], [], []>} : vector<64x128xbf16>, vector<128x128xbf16>, vector<64x128xf32> -> vector<64x128xf32>
      %c0_15 = arith.constant 0 : index
      %c0_16 = arith.constant 0 : index
      %15 = vector.load %arg9[%c0_15, %c0_16] : memref<64x128xf32, #tpu.memory_space<vmem>>, vector<64x128xf32>
      %16 = arith.truncf %15 : vector<64x128xf32> to vector<64x128xbf16>
      %c0_17 = arith.constant 0 : index
      %c0_18 = arith.constant 0 : index
      %17 = vector.load %arg6[%c0_17, %c0_18] : memref<128x128xbf16, #tpu.memory_space<vmem>>, vector<128x128xbf16>
      %cst_19 = arith.constant dense<0.000000e+00> : vector<64x128xf32>
      %18 = tpu.matmul %16, %17, %cst_19 {dimension_numbers = #tpu.dot_dimension_numbers<[1], [0], [0], [1], [0, 0, 1, 1], [], []>} : vector<64x128xbf16>, vector<128x128xbf16>, vector<64x128xf32> -> vector<64x128xf32>
      %19 = arith.addf %14, %18 : vector<64x128xf32>
      %c0_20 = arith.constant 0 : index
      %c0_21 = arith.constant 0 : index
      %20 = vector.load %arg7[%c0_20, %c0_21] : memref<1x128xf32, #tpu.memory_space<vmem>>, vector<1x128xf32>
      %21 = vector.broadcast %20 : vector<1x128xf32> to vector<64x128xf32>
      %22 = arith.addf %19, %21 : vector<64x128xf32>
      %c0_22 = arith.constant 0 : index
      %c0_23 = arith.constant 0 : index
      %23 = vector.load %arg8[%c0_22, %c0_23] : memref<64x128xf32, #tpu.memory_space<vmem>>, vector<64x128xf32>
      tpu.vector_store %arg8[%c0_22, %c0_23], %22 {strides = array<i32>} : memref<64x128xf32, #tpu.memory_space<vmem>>, vector<64x128xf32>,
    } else {
    }
    return
  }
  func.func @transform_0(%arg0: i32, %arg1: i32) -> (i32, i32) {
    %c0_i32 = arith.constant 0 : i32
    return %arg0, %arg1 : i32, i32
  }
  func.func @transform_1(%arg0: i32, %arg1: i32) -> (i32, i32) {
    %c0_i32 = arith.constant 0 : i32
    %c0_i32_0 = arith.constant 0 : i32
    return %arg1, %c0_i32 : i32, i32
  }
  func.func @transform_2(%arg0: i32, %arg1: i32) -> (i32, i32) {
    %c0_i32 = arith.constant 0 : i32
    %c0_i32_0 = arith.constant 0 : i32
    return %arg0, %c0_i32 : i32, i32
  }
  func.func @transform_3(%arg0: i32, %arg1: i32) -> (i32, i32) {
    %c0_i32 = arith.constant 0 : i32
    %c0_i32_0 = arith.constant 0 : i32
    %c0_i32_1 = arith.constant 0 : i32
    return %c0_i32, %c0_i32_0 : i32, i32
  }
  func.func @transform_4(%arg0: i32, %arg1: i32) -> (i32, i32) {
    %c0_i32 = arith.constant 0 : i32
    %c0_i32_0 = arith.constant 0 : i32
    %c0_i32_1 = arith.constant 0 : i32
    return %c0_i32, %c0_i32_0 : i32, i32
  }
  func.func @transform_5(%arg0: i32, %arg1: i32) -> (i32, i32) {
    %c0_i32 = arith.constant 0 : i32
    %c0_i32_0 = arith.constant 0 : i32
    %c0_i32_1 = arith.constant 0 : i32
    return %c0_i32, %c0_i32_0 : i32, i32
  }
  func.func @transform_6(%arg0: i32, %arg1: i32) -> (i32, i32) {
    %c0_i32 = arith.constant 0 : i32
    %c0_i32_0 = arith.constant 0 : i32
    return %arg0, %c0_i32 : i32, i32
  }
}

</mosaic_0001>

<bundles_post_ra>
// kernel: sage_forward.5
= control target key start
LH: loop header
LB: loop body
LE: loop exit
PB: predicated region body
PF: predicated region fallthrough
CT: control target
= control target key end

     0   :  { %s1958_s0 = inlined_call_operand.vmem [shape: bf16[32,16], index: 0, kind: input, shape index: {}]   ;;  %s1959_s1 = inlined_call_operand.<no memory space> [shape: bf16[], index: 1, kind: input, shape index: {}]   ;;  %s1960_s2 = inlined_call_operand.vmem [shape: bf16[32,16], index: 2, kind: input, shape index: {}]   ;;  %s1961_s3 = inlined_call_operand.vmem [shape: bf16[64,128], index: 3, kind: input, shape index: {}]   ;;  %s1962_s4 = inlined_call_operand.vmem [shape: bf16[16,32], index: 4, kind: input, shape index: {}]   ;;  %s1963_s5 = inlined_call_operand.vmem [shape: f32[16], index: 5, kind: input, shape index: {}]   ;;  %s1964_s6 = inlined_call_operand.<no memory space> [shape: f32[], index: 6, kind: input, shape index: {}]   ;;  %s1965_s7 = inlined_call_operand.vmem [shape: f32[64,128], index: 7, kind: output, shape index: {}]  }
   0x1   :  { %v12_v0 = vstv %s1959_s1  ;;  %v37_v1 = vstv %s1964_s6 }
   0x2   :  { %v1813_v2 = vunpack.i.l.bf16 %v12_v0 }
   0x3   :  { %v125_v3 = vld [vmem:[%s1961_s3] sm:$0xff]   ;;  %v62_v5 = vlaneseq  ;;  %v1728_v6 = vld [vmem:[%s1961_s3 + $0x8] sm:$0xff]   ;;  %v1730_v7 = vld [vmem:[%s1961_s3 + $0x10] sm:$0xff]   ;;  %v1766_v15 = vmov 0.0  }
   0x4   :  { %v1820_v4 = vpack.c.bf16 %v1813_v2, %v1813_v2  ;;  %130 = vst [vmem:[#allocation34] sm:$0xff] %v125_v3   ;;  %1456 = vst [vmem:[#allocation34 + $0x8] sm:$0xff] %v1728_v6   ;;  %v1732_v9 = vld [vmem:[%s1961_s3 + $0x18] sm:$0xff]   ;;  %v59_v10 = vld [vmem:[%s1962_s4] sm:$0xff]  }
   0x5   :  { %v1836_v8 = vand.u32 127, %v62_v5  ;;  %1461 = vst [vmem:[#allocation34 + $0x10] sm:$0xff] %v1730_v7   ;;  %v60_v11 = vunpack.c.l.bf16 %v59_v10  ;;  %v81_v12 = vunpack.c.h.bf16 %v59_v10  ;;  %1466 = vst [vmem:[#allocation34 + $0x18] sm:$0xff] %v1732_v9  }
   0x6   :  { %1471 = vst [vmem:[#allocation34 + $0x20] sm:$0xff] %v1820_v4   ;;  %1441 = vst [vmem:[#allocation33 + $0x8] sm:$0xff] %v1820_v4  }
   0x7   :  { %1446 = vst [vmem:[#allocation33 + $0x10] sm:$0xff] %v1820_v4   ;;  %1451 = vst [vmem:[#allocation33 + $0x18] sm:$0xff] %v1820_v4   ;;  %vm65_vm0 = vcmp.lt.s32.totalorder %v1836_v8, 32 }
   0x8   :  { %1476 = vst [vmem:[#allocation34 + $0x28] sm:$0xff] %v1820_v4   ;;  %1481 = vst [vmem:[#allocation34 + $0x30] sm:$0xff] %v1820_v4   ;;  %v66_v13 = vsel %vm65_vm0, %v60_v11, %v1813_v2  ;;  %v87_v14 = vsel %vm65_vm0, %v81_v12, %v1813_v2 }
   0x9   :  { %1486 = vst [vmem:[#allocation34 + $0x38] sm:$0xff] %v1820_v4   ;;  %v67_v16 = vpack.c.bf16 %v1766_v15, %v66_v13  ;;  %v89_v17 = vpack.c.bf16 %v1766_v15, %v87_v14 }
   0xb   :  { %v1727_v18 = vld [vmem:[#allocation34] sm:$0xff]   ;;  %69 = vst [vmem:[#allocation33] sm:$0xf] %v67_v16  ;;  %91 = vst [vmem:[#allocation33 + $0x4] sm:$0xf] %v89_v17  ;;  %v1729_v19 = vld [vmem:[#allocation34 + $0x8] sm:$0xff]  }
   0xc   :  { %1630 = vmatprep.subr.bf16.mxu0 %v1727_v18  ;;  %v1731_v20 = vld [vmem:[#allocation34 + $0x10] sm:$0xff]   ;;  %v1733_v21 = vld [vmem:[#allocation34 + $0x18] sm:$0xff]  }
   0xd   :  { %1631 = vmatpush3.bf16.msra.mxu0 %v1727_v18  ;;  %v1734_v23 = vld [vmem:[#allocation34 + $0x20] sm:$0xff]   ;;  %v1739_v27 = vld [vmem:[#allocation33 + $0x8] sm:$0xff]  }
   0xe   :  { %1632 = vmatprep.subr.bf16.mxu0 %v1729_v19  ;;  %v1740_v28 = vld [vmem:[#allocation33 + $0x10] sm:$0xff]   ;;  %v1741_v29 = vld [vmem:[#allocation33 + $0x18] sm:$0xff]  }
   0xf   :  { %v1735_v24 = vld [vmem:[#allocation34 + $0x28] sm:$0xff]   ;;  %v1736_v25 = vld [vmem:[#allocation34 + $0x30] sm:$0xff]  }
  0x10   :  { %v1737_v26 = vld [vmem:[#allocation34 + $0x38] sm:$0xff]  }
  0x11   :  { %1633 = vmatpush3.bf16.msra.mxu0 %v1729_v19 }
  0x12   :  { %1634 = vmatprep.subr.bf16.mxu0 %v1731_v20  ;;  %v1738_v22 = vld [vmem:[#allocation33] sm:$0xff]  }
  0x13   :  { %1646 = vmatprep.mubr.bf16.mxu0 %v1738_v22 }
  0x15   :  { %1635 = vmatpush3.bf16.msra.mxu0 %v1731_v20 }
  0x16   :  { %1636 = vmatprep.subr.bf16.mxu0 %v1733_v21 }
  0x19   :  { %1637 = vmatpush3.bf16.msra.mxu0 %v1733_v21 }
  0x1a   :  { %1638 = vmatprep.subr.bf16.mxu0 %v1734_v23 }
  0x1d   :  { %1639 = vmatpush3.bf16.msra.mxu0 %v1734_v23 }
  0x1e   :  { %1640 = vmatprep.subr.bf16.mxu0 %v1735_v24 }
  0x21   :  { %1641 = vmatpush3.bf16.msra.mxu0 %v1735_v24 }
  0x22   :  { %1642 = vmatprep.subr.bf16.mxu0 %v1736_v25 }
  0x25   :  { %1643 = vmatpush3.bf16.msra.mxu0 %v1736_v25 }
  0x26   :  { %1644 = vmatprep.subr.bf16.mxu0 %v1737_v26 }
  0x29   :  { %1645 = vmatpush3.bf16.msra.mxu0 %v1737_v26 }
  0x2c   :  { %1647 = vmatmul.mubr.bf16.vlgmr.msra.gmra.mrb[0].mxu0 %v1739_v27 }
  0x2d   :  { %1650 = vmatprep.mubr.bf16.mxu0 %v1740_v28 }
  0x34   :  { %1651 = vmatmul.mubr.bf16.gmra.mrb[4].mxu0 %v1741_v29 }
  0xff   :  { %v1847_v30 = vpop.f32.mrb[0].mxu0 }
 0x100   :  { %v842_v31 = vpop.f32.mrb[1].mxu0 }
 0x101   :  { %v1849_v32 = vpop.f32.mrb[2].mxu0 }
 0x102   :  { %v845_v33 = vpop.f32.mrb[3].mxu0 }
 0x107   :  { %v1851_v34 = vpop.f32.mrb[4].mxu0 }
 0x108   :  { %v1853_v35 = vpop.f32.mrb[5].mxu0 }
 0x109   :  { %v1855_v36 = vpop.f32.mrb[6].mxu0 }
 0x10a   :  { %v1857_v37 = vpop.f32.mrb[7].mxu0 }
 0x10b   :  { %v1309_v38 = vld [vmem:[%s1960_s2] sm:$0xff]   ;;  %vm1313_vm1 = vcmp.lt.s32.totalorder %v1836_v8, 16  ;;  %v1404_v40 = vld [vmem:[%s1960_s2 + $0x8] sm:$0xff]   ;;  %1501 = vst [vmem:[#allocation41 + $0x10] sm:$0xff] %v1820_v4   ;;  %1541 = vst [vmem:[#allocation40 + $0x10] sm:$0xff] %v1820_v4   ;;  %v924_v41 = vpack.c.bf16 %v845_v33, %v842_v31  ;;  %v925_v22 = vpack.c.bf16 %v1849_v32, %v1847_v30  ;;  %v926_v24 = vpack.c.bf16 %v1857_v37, %v1853_v35 }
 0x10c   :  { %v1253_v39 = vld [vmem:[%s1958_s0] sm:$0xff]   ;;  %1506 = vst [vmem:[#allocation41 + $0x18] sm:$0xff] %v1820_v4   ;;  %1546 = vst [vmem:[#allocation40 + $0x18] sm:$0xff] %v1820_v4   ;;  %v1310_v42 = vunpack.c.l.bf16 %v1309_v38  ;;  %v1317_v43 = vunpack.c.h.bf16 %v1309_v38  ;;  %v1407_v46 = vld [vmem:[%s1958_s0 + $0x8] sm:$0xff]   ;;  %v1324_v47 = vunpack.c.l.bf16 %v1404_v40  ;;  %v1331_v48 = vunpack.c.h.bf16 %v1404_v40 }
 0x10d   :  { %1511 = vst [vmem:[#allocation41 + $0x20] sm:$0xff] %v1820_v4   ;;  %1551 = vst [vmem:[#allocation40 + $0x20] sm:$0xff] %v1820_v4   ;;  %v1254_v44 = vunpack.c.l.bf16 %v1253_v39  ;;  %v1261_v45 = vunpack.c.h.bf16 %v1253_v39  ;;  %v1268_v49 = vunpack.c.l.bf16 %v1407_v46  ;;  %v1275_v50 = vunpack.c.h.bf16 %v1407_v46  ;;  %1670 = vmatprep.mubr.bf16.mxu1 %v924_v41  ;;  %v1758_v51 = vld [vmem:[%s1961_s3] sm:$0xff]   ;;  %v1760_v56 = vld [vmem:[%s1961_s3 + $0x8] sm:$0xff]  }
 0x10e   :  { %1516 = vst [vmem:[#allocation41 + $0x28] sm:$0xff] %v1820_v4   ;;  %1556 = vst [vmem:[#allocation40 + $0x28] sm:$0xff] %v1820_v4   ;;  %v1314_v52 = vsel %vm1313_vm1, %v1310_v42, %v1813_v2  ;;  %v1321_v53 = vsel %vm1313_vm1, %v1317_v43, %v1813_v2  ;;  %v1328_v59 = vsel %vm1313_vm1, %v1324_v47, %v1813_v2  ;;  %v1762_v61 = vld [vmem:[%s1961_s3 + $0x10] sm:$0xff]   ;;  %v1764_v3 = vld [vmem:[%s1961_s3 + $0x18] sm:$0xff]   ;;  %vm1367_vm2 = vcmp.lt.s32.totalorder %v62_v5, 16 }
 0x10f   :  { %1521 = vst [vmem:[#allocation41 + $0x30] sm:$0xff] %v1820_v4   ;;  %1561 = vst [vmem:[#allocation40 + $0x30] sm:$0xff] %v1820_v4   ;;  %v1258_v54 = vsel %vm1313_vm1, %v1254_v44, %v1813_v2  ;;  %v1265_v55 = vsel %vm1313_vm1, %v1261_v45, %v1813_v2  ;;  %v1490_v57 = vpack.c.bf16 %v1321_v53, %v1314_v52  ;;  %v1365_v28 = vld [vmem:[%s1963_s5] sm:$0x1] }
 0x110   :  { %1526 = vst [vmem:[#allocation41 + $0x38] sm:$0xff] %v1820_v4   ;;  %1566 = vst [vmem:[#allocation40 + $0x38] sm:$0xff] %v1820_v4   ;;  %v1530_v58 = vpack.c.bf16 %v1265_v55, %v1258_v54  ;;  %v1335_v60 = vsel %vm1313_vm1, %v1331_v48, %v1813_v2  ;;  %v1272_v63 = vsel %vm1313_vm1, %v1268_v49, %v1813_v2 }
 0x111   :  { %1571 = vst [vmem:[#allocation39] sm:$0xff] %v1758_v51   ;;  %v1495_v62 = vpack.c.bf16 %v1335_v60, %v1328_v59  ;;  %v1279_v0 = vsel %vm1313_vm1, %v1275_v50, %v1813_v2  ;;  %1576 = vst [vmem:[#allocation39 + $0x8] sm:$0xff] %v1760_v56   ;;  %v927_v25 = vpack.c.bf16 %v1855_v36, %v1851_v34 }
 0x112   :  { %1491 = vst [vmem:[#allocation41] sm:$0xff] %v1490_v57   ;;  %1531 = vst [vmem:[#allocation40] sm:$0xff] %v1530_v58   ;;  %v1535_v4 = vpack.c.bf16 %v1279_v0, %v1272_v63  ;;  %v1746_v2 = vld [vmem:[#allocation41 + $0x10] sm:$0xff]   ;;  %v1368_v29 = vsel %vm1367_vm2, %v1365_v28, %v37_v1 }
 0x113   :  { %1581 = vst [vmem:[#allocation39 + $0x10] sm:$0xff] %v1762_v61   ;;  %1496 = vst [vmem:[#allocation41 + $0x8] sm:$0xff] %v1495_v62   ;;  %v1747_v10 = vld [vmem:[#allocation40 + $0x10] sm:$0xff]   ;;  %v1748_v11 = vld [vmem:[#allocation41 + $0x18] sm:$0xff]  }
 0x114   :  { %1586 = vst [vmem:[#allocation39 + $0x18] sm:$0xff] %v1764_v3   ;;  %1536 = vst [vmem:[#allocation40 + $0x8] sm:$0xff] %v1535_v4   ;;  %v1749_v12 = vld [vmem:[#allocation40 + $0x18] sm:$0xff]   ;;  %v1750_v14 = vld [vmem:[#allocation41 + $0x20] sm:$0xff]  }
 0x115   :  { %v1751_v15 = vld [vmem:[#allocation40 + $0x20] sm:$0xff]   ;;  %v1752_v16 = vld [vmem:[#allocation41 + $0x28] sm:$0xff]   ;;  %1369 = vst [vmem:[#allocation42] sm:$0x1] %v1368_v29 }
 0x116   :  { %v1753_v17 = vld [vmem:[#allocation40 + $0x28] sm:$0xff]   ;;  %v1754_v18 = vld [vmem:[#allocation41 + $0x30] sm:$0xff]  }
 0x117   :  { %v1755_v19 = vld [vmem:[#allocation40 + $0x30] sm:$0xff]   ;;  %v1756_v20 = vld [vmem:[#allocation41 + $0x38] sm:$0xff]  }
 0x118   :  { %v1759_v13 = vld [vmem:[#allocation39] sm:$0xff]   ;;  %v1757_v21 = vld [vmem:[#allocation40 + $0x38] sm:$0xff]   ;;  %v1761_v23 = vld [vmem:[#allocation39 + $0x8] sm:$0xff]  }
 0x119   :  { %v1742_v6 = vld [vmem:[#allocation41] sm:$0xff]   ;;  %1694 = vmatprep.mubr.bf16.mxu0 %v1759_v13 }
 0x11a   :  { %v1743_v7 = vld [vmem:[#allocation40] sm:$0xff]   ;;  %1654 = vmatprep.subr.bf16.mxu1 %v1742_v6  ;;  %v1744_v9 = vld [vmem:[#allocation41 + $0x8] sm:$0xff]   ;;  %v1763_v26 = vld [vmem:[#allocation39 + $0x10] sm:$0xff]  }
 0x11b   :  { %1678 = vmatprep.subr.bf16.mxu0 %v1743_v7  ;;  %1655 = vmatpush3.bf16.msra.mxu1 %v1742_v6  ;;  %v1745_v8 = vld [vmem:[#allocation40 + $0x8] sm:$0xff]   ;;  %v1765_v27 = vld [vmem:[#allocation39 + $0x18] sm:$0xff]  }
 0x11c   :  { %1679 = vmatpush3.bf16.msra.mxu0 %v1743_v7  ;;  %1656 = vmatprep.subr.bf16.mxu1 %v1744_v9  ;;  %v1436_v32 = vld [vmem:[#allocation42] ss:$0 sm:$0xff] }
 0x11d   :  { %1680 = vmatprep.subr.bf16.mxu0 %v1745_v8 }
 0x11f   :  { %1657 = vmatpush3.bf16.msra.mxu1 %v1744_v9 }
 0x120   :  { %1681 = vmatpush3.bf16.msra.mxu0 %v1745_v8  ;;  %1658 = vmatprep.subr.bf16.mxu1 %v1746_v2 }
 0x121   :  { %1682 = vmatprep.subr.bf16.mxu0 %v1747_v10 }
 0x123   :  { %1659 = vmatpush3.bf16.msra.mxu1 %v1746_v2 }
 0x124   :  { %1683 = vmatpush3.bf16.msra.mxu0 %v1747_v10  ;;  %1660 = vmatprep.subr.bf16.mxu1 %v1748_v11 }
 0x125   :  { %1684 = vmatprep.subr.bf16.mxu0 %v1749_v12 }
 0x127   :  { %1661 = vmatpush3.bf16.msra.mxu1 %v1748_v11 }
 0x128   :  { %1685 = vmatpush3.bf16.msra.mxu0 %v1749_v12  ;;  %1662 = vmatprep.subr.bf16.mxu1 %v1750_v14 }
 0x129   :  { %1686 = vmatprep.subr.bf16.mxu0 %v1751_v15 }
 0x12b   :  { %1663 = vmatpush3.bf16.msra.mxu1 %v1750_v14 }
 0x12c   :  { %1687 = vmatpush3.bf16.msra.mxu0 %v1751_v15  ;;  %1664 = vmatprep.subr.bf16.mxu1 %v1752_v16 }
 0x12d   :  { %1688 = vmatprep.subr.bf16.mxu0 %v1753_v17 }
 0x12f   :  { %1665 = vmatpush3.bf16.msra.mxu1 %v1752_v16 }
 0x130   :  { %1689 = vmatpush3.bf16.msra.mxu0 %v1753_v17  ;;  %1666 = vmatprep.subr.bf16.mxu1 %v1754_v18 }
 0x131   :  { %1690 = vmatprep.subr.bf16.mxu0 %v1755_v19 }
 0x133   :  { %1667 = vmatpush3.bf16.msra.mxu1 %v1754_v18 }
 0x134   :  { %1691 = vmatpush3.bf16.msra.mxu0 %v1755_v19  ;;  %1668 = vmatprep.subr.bf16.mxu1 %v1756_v20 }
 0x135   :  { %1692 = vmatprep.subr.bf16.mxu0 %v1757_v21 }
 0x137   :  { %1669 = vmatpush3.bf16.msra.mxu1 %v1756_v20 }
 0x138   :  { %1693 = vmatpush3.bf16.msra.mxu0 %v1757_v21  ;;  %1702 = vmatprep.subr.bf16.mxu1 %v1743_v7 }
 0x13a   :  { %1671 = vmatmul.mubr.bf16.vlgmr.msra.gmra.mrb[0].mxu1 %v925_v22 }
 0x13b   :  { %1695 = vmatmul.mubr.bf16.vlgmr.msra.gmra.mrb[8].mxu0 %v1761_v23  ;;  %1710 = vmatpush3.bf16.msra.mxu1 %v1743_v7 }
 0x13c   :  { %1703 = vmatprep.subr.bf16.mxu1 %v1745_v8  ;;  %1674 = vmatprep.mubr.bf16.mxu1 %v926_v24 }
 0x13f   :  { %1711 = vmatpush3.bf16.msra.mxu1 %v1745_v8 }
 0x140   :  { %1704 = vmatprep.subr.bf16.mxu1 %v1747_v10 }
 0x142   :  { %1675 = vmatmul.mubr.bf16.gmra.mrb[4].mxu1 %v927_v25 }
 0x143   :  { %1712 = vmatpush3.bf16.msra.mxu1 %v1747_v10  ;;  %1698 = vmatprep.mubr.bf16.mxu1 %v1763_v26 }
 0x144   :  { %1705 = vmatprep.subr.bf16.mxu1 %v1749_v12 }
 0x147   :  { %1713 = vmatpush3.bf16.msra.mxu1 %v1749_v12 }
 0x148   :  { %1706 = vmatprep.subr.bf16.mxu1 %v1751_v15 }
 0x14b   :  { %1714 = vmatpush3.bf16.msra.mxu1 %v1751_v15 }
 0x14c   :  { %1707 = vmatprep.subr.bf16.mxu1 %v1753_v17 }
 0x14f   :  { %1715 = vmatpush3.bf16.msra.mxu1 %v1753_v17 }
 0x150   :  { %1708 = vmatprep.subr.bf16.mxu1 %v1755_v19 }
 0x153   :  { %1716 = vmatpush3.bf16.msra.mxu1 %v1755_v19 }
 0x154   :  { %1709 = vmatprep.subr.bf16.mxu1 %v1757_v21 }
 0x157   :  { %1717 = vmatpush3.bf16.msra.mxu1 %v1757_v21 }
 0x15a   :  { %1699 = vmatmul.mubr.bf16.vlgmr.msra.gmra.mrb[4].mxu1 %v1765_v27 }
 0x20d   :  { %v1672_v30 = vpop.f32.mrb[0].mxu1 }
 0x20e   :  { %v1696_v31 = vpop.f32.mrb[8].mxu0  ;;  %v1026_v33 = vpop.f32.mrb[1].mxu1 }
 0x20f   :  { %v1172_v34 = vadd.f32 %v1696_v31, %v1672_v30  ;;  %v1163_v35 = vpop.f32.mrb[9].mxu0  ;;  %v1673_v36 = vpop.f32.mrb[2].mxu1 }
 0x210   :  { %v1164_v37 = vadd.f32 %v1163_v35, %v1026_v33  ;;  %v1697_v38 = vpop.f32.mrb[10].mxu0  ;;  %v1029_v39 = vpop.f32.mrb[3].mxu1 }
 0x211   :  { %v1203_v40 = vadd.f32 %v1436_v32, %v1172_v34  ;;  %v1175_v41 = vadd.f32 %v1697_v38, %v1673_v36  ;;  %v1166_v42 = vpop.f32.mrb[11].mxu0 }
 0x212   :  { %v1201_v5 = vadd.f32 %v1436_v32, %v1164_v37  ;;  %v1167_v43 = vadd.f32 %v1166_v42, %v1029_v39 }
 0x213   :  { %1211 = vst [vmem:[%s1965_s7 + $0x10] sm:$0xff] %v1203_v40  ;;  %v1204_v1 = vadd.f32 %v1436_v32, %v1175_v41 }
 0x214   :  { %1209 = vst [vmem:[%s1965_s7] sm:$0xff] %v1201_v5  ;;  %v1202_v44 = vadd.f32 %v1436_v32, %v1167_v43 }
 0x215   :  { %1212 = vst [vmem:[%s1965_s7 + $0x18] sm:$0xff] %v1204_v1 }
 0x216   :  { %1210 = vst [vmem:[%s1965_s7 + $0x8] sm:$0xff] %v1202_v44 }
 0x22d   :  { %v1700_v45 = vpop.f32.mrb[4].mxu1 }
 0x22e   :  { %v1207_v46 = vadd.f32 %v1700_v45, %v1436_v32  ;;  %v1179_v47 = vpop.f32.mrb[5].mxu1 }
 0x22f   :  { %v1205_v48 = vadd.f32 %v1436_v32, %v1179_v47  ;;  %v1701_v49 = vpop.f32.mrb[6].mxu1 }
 0x230   :  { %1215 = vst [vmem:[%s1965_s7 + $0x30] sm:$0xff] %v1207_v46  ;;  %v1208_v50 = vadd.f32 %v1701_v49, %v1436_v32  ;;  %v1182_v51 = vpop.f32.mrb[7].mxu1 }
 0x231   :  { %1213 = vst [vmem:[%s1965_s7 + $0x20] sm:$0xff] %v1205_v48  ;;  %v1206_v52 = vadd.f32 %v1436_v32, %v1182_v51 }
 0x232   :  { %1216 = vst [vmem:[%s1965_s7 + $0x38] sm:$0xff] %v1208_v50 }
 0x233   :  { %1214 = vst [vmem:[%s1965_s7 + $0x28] sm:$0xff] %v1206_v52 }

// kernel: sage_forward.4
= control target key start
LH: loop header
LB: loop body
LE: loop exit
PB: predicated region body
PF: predicated region fallthrough
CT: control target
= control target key end

     0   :  { %s2201_s0 = inlined_call_operand.vmem [shape: bf16[64,32], index: 0, kind: input, shape index: {}]   ;;  %s2202_s1 = inlined_call_operand.<no memory space> [shape: bf16[], index: 1, kind: input, shape index: {}]   ;;  %s2203_s2 = inlined_call_operand.vmem [shape: bf16[32,32], index: 2, kind: input, shape index: {}]   ;;  %s2204_s3 = inlined_call_operand.vmem [shape: bf16[32,32], index: 3, kind: input, shape index: {}]   ;;  %s2205_s4 = inlined_call_operand.vmem [shape: bf16[32,64], index: 4, kind: input, shape index: {}]   ;;  %s2206_s5 = inlined_call_operand.vmem [shape: f32[32], index: 5, kind: input, shape index: {}]   ;;  %s2207_s6 = inlined_call_operand.<no memory space> [shape: f32[], index: 6, kind: input, shape index: {}]   ;;  %s2208_s7 = inlined_call_operand.vmem [shape: bf16[64,128], index: 7, kind: output, shape index: {}]  }
   0x1   :  { %v12_v0 = vstv %s2202_s1  ;;  %v37_v1 = vstv %s2207_s6 }
   0x2   :  { %v2008_v2 = vunpack.i.l.bf16 %v12_v0 }
   0x3   :  { %v62_v3 = vlaneseq  ;;  %v161_v4 = vld [vmem:[%s2201_s0] sm:$0xff]   ;;  %v1562_v5 = vld [vmem:[%s2201_s0 + $0x8] sm:$0xff]   ;;  %v1564_v6 = vld [vmem:[%s2201_s0 + $0x10] sm:$0xff]   ;;  %v1961_v28 = vmov 0.0  }
   0x4   :  { %v2021_v7 = vpack.c.bf16 %v2008_v2, %v2008_v2  ;;  %v162_v8 = vunpack.c.l.bf16 %v161_v4  ;;  %v183_v9 = vunpack.c.h.bf16 %v161_v4  ;;  %v205_v10 = vunpack.c.l.bf16 %v1562_v5  ;;  %v1566_v12 = vld [vmem:[%s2201_s0 + $0x18] sm:$0xff]   ;;  %v59_v13 = vld [vmem:[%s2205_s4] sm:$0xff]   ;;  %v1559_v14 = vld [vmem:[%s2205_s4 + $0x8] sm:$0xff]  }
   0x5   :  { %v227_v11 = vunpack.c.h.bf16 %v1562_v5  ;;  %v2033_v15 = vand.u32 127, %v62_v3  ;;  %v249_v16 = vunpack.c.l.bf16 %v1564_v6  ;;  %v271_v17 = vunpack.c.h.bf16 %v1564_v6 }
   0x6   :  { %1657 = vst [vmem:[#allocation34 + $0x20] sm:$0xff] %v2021_v7   ;;  %1647 = vst [vmem:[#allocation33 + $0x10] sm:$0xff] %v2021_v7   ;;  %v293_v18 = vunpack.c.l.bf16 %v1566_v12  ;;  %v315_v19 = vunpack.c.h.bf16 %v1566_v12  ;;  %v60_v20 = vunpack.c.l.bf16 %v59_v13  ;;  %v81_v21 = vunpack.c.h.bf16 %v59_v13 }
   0x7   :  { %1652 = vst [vmem:[#allocation33 + $0x18] sm:$0xff] %v2021_v7   ;;  %1662 = vst [vmem:[#allocation34 + $0x28] sm:$0xff] %v2021_v7   ;;  %vm167_vm0 = vcmp.lt.s32.totalorder %v2033_v15, 32  ;;  %vm65_vm1 = vcmp.lt.s32.totalorder %v2033_v15, 64  ;;  %v103_v22 = vunpack.c.l.bf16 %v1559_v14  ;;  %v125_v23 = vunpack.c.h.bf16 %v1559_v14 }
   0x8   :  { %1667 = vst [vmem:[#allocation34 + $0x30] sm:$0xff] %v2021_v7   ;;  %1672 = vst [vmem:[#allocation34 + $0x38] sm:$0xff] %v2021_v7   ;;  %v168_v24 = vsel %vm167_vm0, %v162_v8, %v2008_v2  ;;  %v189_v25 = vsel %vm167_vm0, %v183_v9, %v2008_v2  ;;  %v211_v26 = vsel %vm167_vm0, %v205_v10, %v2008_v2 }
   0x9   :  { %v233_v27 = vsel %vm167_vm0, %v227_v11, %v2008_v2  ;;  %v169_v29 = vpack.c.bf16 %v1961_v28, %v168_v24  ;;  %v191_v30 = vpack.c.bf16 %v1961_v28, %v189_v25  ;;  %v213_v31 = vpack.c.bf16 %v1961_v28, %v211_v26 }
   0xa   :  { %v235_v32 = vpack.c.bf16 %v1961_v28, %v233_v27  ;;  %v255_v33 = vsel %vm167_vm0, %v249_v16, %v2008_v2  ;;  %v277_v34 = vsel %vm167_vm0, %v271_v17, %v2008_v2  ;;  %v299_v35 = vsel %vm167_vm0, %v293_v18, %v2008_v2 }
   0xb   :  { %v321_v36 = vsel %vm167_vm0, %v315_v19, %v2008_v2  ;;  %171 = vst [vmem:[#allocation34] sm:$0xf] %v169_v29  ;;  %193 = vst [vmem:[#allocation34 + $0x4] sm:$0xf] %v191_v30  ;;  %v257_v37 = vpack.c.bf16 %v1961_v28, %v255_v33  ;;  %v279_v38 = vpack.c.bf16 %v1961_v28, %v277_v34 }
   0xc   :  { %215 = vst [vmem:[#allocation34 + $0x8] sm:$0xf] %v213_v31  ;;  %237 = vst [vmem:[#allocation34 + $0xc] sm:$0xf] %v235_v32  ;;  %v301_v39 = vpack.c.bf16 %v1961_v28, %v299_v35  ;;  %v323_v40 = vpack.c.bf16 %v1961_v28, %v321_v36  ;;  %v66_v41 = vsel %vm65_vm1, %v60_v20, %v2008_v2 }
   0xd   :  { %v87_v42 = vsel %vm65_vm1, %v81_v21, %v2008_v2  ;;  %v109_v43 = vsel %vm65_vm1, %v103_v22, %v2008_v2  ;;  %v131_v44 = vsel %vm65_vm1, %v125_v23, %v2008_v2  ;;  %259 = vst [vmem:[#allocation34 + $0x10] sm:$0xf] %v257_v37  ;;  %281 = vst [vmem:[#allocation34 + $0x14] sm:$0xf] %v279_v38  ;;  %v1933_v54 = vld [vmem:[#allocation34 + $0x20] sm:$0xff]   ;;  %v1939_v59 = vld [vmem:[#allocation33 + $0x10] sm:$0xff]  }
   0xe   :  { %303 = vst [vmem:[#allocation34 + $0x18] sm:$0xf] %v301_v39  ;;  %325 = vst [vmem:[#allocation34 + $0x1c] sm:$0xf] %v323_v40  ;;  %v67_v45 = vpack.c.bf16 %v1961_v28, %v66_v41  ;;  %v89_v46 = vpack.c.bf16 %v1961_v28, %v87_v42  ;;  %v111_v47 = vpack.c.bf16 %v1961_v28, %v109_v43  ;;  %v1934_v55 = vld [vmem:[#allocation34 + $0x28] sm:$0xff]   ;;  %v1940_v60 = vld [vmem:[#allocation33 + $0x18] sm:$0xff]  }
   0xf   :  { %v133_v48 = vpack.c.bf16 %v1961_v28, %v131_v44  ;;  %v1935_v56 = vld [vmem:[#allocation34 + $0x30] sm:$0xff]   ;;  %v1936_v57 = vld [vmem:[#allocation34 + $0x38] sm:$0xff]  }
  0x10   :  { %69 = vst [vmem:[#allocation33] sm:$0xf] %v67_v45  ;;  %91 = vst [vmem:[#allocation33 + $0x4] sm:$0xf] %v89_v46 }
  0x11   :  { %113 = vst [vmem:[#allocation33 + $0x8] sm:$0xf] %v111_v47  ;;  %135 = vst [vmem:[#allocation33 + $0xc] sm:$0xf] %v133_v48 }
  0x12   :  { %v1929_v49 = vld [vmem:[#allocation34] sm:$0xff]  }
  0x13   :  { %v1930_v50 = vld [vmem:[#allocation34 + $0x8] sm:$0xff]   ;;  %1832 = vmatprep.subr.bf16.mxu0 %v1929_v49 }
  0x14   :  { %1833 = vmatpush3.bf16.msra.mxu0 %v1929_v49  ;;  %v1931_v51 = vld [vmem:[#allocation34 + $0x10] sm:$0xff]  }
  0x15   :  { %1834 = vmatprep.subr.bf16.mxu0 %v1930_v50  ;;  %v1932_v53 = vld [vmem:[#allocation34 + $0x18] sm:$0xff]  }
  0x17   :  { %v1937_v52 = vld [vmem:[#allocation33] sm:$0xff]  }
  0x18   :  { %1848 = vmatprep.mubr.bf16.mxu0 %v1937_v52  ;;  %1835 = vmatpush3.bf16.msra.mxu0 %v1930_v50  ;;  %v1938_v58 = vld [vmem:[#allocation33 + $0x8] sm:$0xff]  }
  0x19   :  { %1836 = vmatprep.subr.bf16.mxu0 %v1931_v51 }
  0x1c   :  { %1837 = vmatpush3.bf16.msra.mxu0 %v1931_v51 }
  0x1d   :  { %1838 = vmatprep.subr.bf16.mxu0 %v1932_v53 }
  0x20   :  { %1839 = vmatpush3.bf16.msra.mxu0 %v1932_v53 }
  0x21   :  { %1840 = vmatprep.subr.bf16.mxu0 %v1933_v54 }
  0x24   :  { %1841 = vmatpush3.bf16.msra.mxu0 %v1933_v54 }
  0x25   :  { %1842 = vmatprep.subr.bf16.mxu0 %v1934_v55 }
  0x28   :  { %1843 = vmatpush3.bf16.msra.mxu0 %v1934_v55 }
  0x29   :  { %1844 = vmatprep.subr.bf16.mxu0 %v1935_v56 }
  0x2c   :  { %1845 = vmatpush3.bf16.msra.mxu0 %v1935_v56 }
  0x2d   :  { %1846 = vmatprep.subr.bf16.mxu0 %v1936_v57 }
  0x30   :  { %1847 = vmatpush3.bf16.msra.mxu0 %v1936_v57 }
  0x33   :  { %1849 = vmatmul.mubr.bf16.vlgmr.msra.gmra.mrb[0].mxu0 %v1938_v58 }
  0x34   :  { %1852 = vmatprep.mubr.bf16.mxu0 %v1939_v59 }
  0x3b   :  { %1853 = vmatmul.mubr.bf16.gmra.mrb[4].mxu0 %v1940_v60 }
 0x106   :  { %v2079_v61 = vpop.f32.mrb[0].mxu0 }
 0x107   :  { %v958_v62 = vpop.f32.mrb[1].mxu0 }
 0x108   :  { %v2081_v63 = vpop.f32.mrb[2].mxu0 }
 0x109   :  { %v961_v0 = vpop.f32.mrb[3].mxu0 }
 0x10e   :  { %v2083_v4 = vpop.f32.mrb[4].mxu0 }
 0x10f   :  { %v2085_v5 = vpop.f32.mrb[5].mxu0 }
 0x110   :  { %v2087_v6 = vpop.f32.mrb[6].mxu0 }
 0x111   :  { %v2089_v8 = vpop.f32.mrb[7].mxu0 }
 0x112   :  { %v1497_v9 = vld [vmem:[%s2204_s3] sm:$0xff]   ;;  %v1594_v11 = vld [vmem:[%s2204_s3 + $0x8] sm:$0xff]   ;;  %1687 = vst [vmem:[#allocation41 + $0x10] sm:$0xff] %v2021_v7   ;;  %1727 = vst [vmem:[#allocation40 + $0x10] sm:$0xff] %v2021_v7   ;;  %v1040_v12 = vpack.c.bf16 %v961_v0, %v958_v62  ;;  %vm1555_vm2 = vcmp.lt.s32.totalorder %v62_v3, 32 }
 0x113   :  { %v1441_v10 = vld [vmem:[%s2203_s2] sm:$0xff]   ;;  %1692 = vst [vmem:[#allocation41 + $0x18] sm:$0xff] %v2021_v7   ;;  %1732 = vst [vmem:[#allocation40 + $0x18] sm:$0xff] %v2021_v7   ;;  %v1498_v13 = vunpack.c.l.bf16 %v1497_v9  ;;  %v1505_v14 = vunpack.c.h.bf16 %v1497_v9  ;;  %v1597_v18 = vld [vmem:[%s2203_s2 + $0x8] sm:$0xff]   ;;  %v1512_v19 = vunpack.c.l.bf16 %v1594_v11  ;;  %v1519_v20 = vunpack.c.h.bf16 %v1594_v11 }
 0x114   :  { %1697 = vst [vmem:[#allocation41 + $0x20] sm:$0xff] %v2021_v7   ;;  %1737 = vst [vmem:[#allocation40 + $0x20] sm:$0xff] %v2021_v7   ;;  %v1442_v16 = vunpack.c.l.bf16 %v1441_v10  ;;  %v1449_v17 = vunpack.c.h.bf16 %v1441_v10  ;;  %v1456_v21 = vunpack.c.l.bf16 %v1597_v18  ;;  %v1463_v22 = vunpack.c.h.bf16 %v1597_v18  ;;  %1872 = vmatprep.mubr.bf16.mxu1 %v1040_v12  ;;  %v1377_v23 = vld [vmem:[%s2201_s0] sm:$0xff]   ;;  %v1600_v27 = vld [vmem:[%s2201_s0 + $0x8] sm:$0xff]  }
 0x115   :  { %1702 = vst [vmem:[#allocation41 + $0x28] sm:$0xff] %v2021_v7   ;;  %1742 = vst [vmem:[#allocation40 + $0x28] sm:$0xff] %v2021_v7   ;;  %v1509_v24 = vsel %vm167_vm0, %v1505_v14, %v2008_v2  ;;  %v1516_v30 = vsel %vm167_vm0, %v1512_v19, %v2008_v2  ;;  %v1523_v31 = vsel %vm167_vm0, %v1519_v20, %v2008_v2  ;;  %v1602_v32 = vld [vmem:[%s2201_s0 + $0x10] sm:$0xff]   ;;  %v1604_v33 = vld [vmem:[%s2201_s0 + $0x18] sm:$0xff]   ;;  %v1378_v37 = vunpack.c.l.bf16 %v1377_v23 }
 0x116   :  { %1707 = vst [vmem:[#allocation41 + $0x30] sm:$0xff] %v2021_v7   ;;  %1747 = vst [vmem:[#allocation40 + $0x30] sm:$0xff] %v2021_v7   ;;  %v1446_v25 = vsel %vm167_vm0, %v1442_v16, %v2008_v2  ;;  %v1453_v26 = vsel %vm167_vm0, %v1449_v17, %v2008_v2  ;;  %v1681_v34 = vpack.c.bf16 %v1523_v31, %v1516_v30  ;;  %v1385_v39 = vunpack.c.h.bf16 %v1377_v23 }
 0x117   :  { %1712 = vst [vmem:[#allocation41 + $0x38] sm:$0xff] %v2021_v7   ;;  %1752 = vst [vmem:[#allocation40 + $0x38] sm:$0xff] %v2021_v7   ;;  %v1502_v7 = vsel %vm167_vm0, %v1498_v13, %v2008_v2  ;;  %v1716_v29 = vpack.c.bf16 %v1453_v26, %v1446_v25  ;;  %v1460_v35 = vsel %vm167_vm0, %v1456_v21, %v2008_v2  ;;  %v1392_v40 = vunpack.c.l.bf16 %v1600_v27 }
 0x118   :  { %v1676_v28 = vpack.c.bf16 %v1509_v24, %v1502_v7  ;;  %v1467_v36 = vsel %vm167_vm0, %v1463_v22, %v2008_v2  ;;  %v1399_v41 = vunpack.c.h.bf16 %v1600_v27  ;;  %1682 = vst [vmem:[#allocation41 + $0x8] sm:$0xff] %v1681_v34   ;;  %v1382_v42 = vsel %vm167_vm0, %v1378_v37, %v2008_v2 }
 0x119   :  { %1717 = vst [vmem:[#allocation40] sm:$0xff] %v1716_v29   ;;  %v1721_v38 = vpack.c.bf16 %v1467_v36, %v1460_v35  ;;  %v1406_v43 = vunpack.c.l.bf16 %v1602_v32  ;;  %v1413_v44 = vunpack.c.h.bf16 %v1602_v32  ;;  %v1420_v45 = vunpack.c.l.bf16 %v1604_v33  ;;  %v1945_v0 = vld [vmem:[#allocation41 + $0x10] sm:$0xff]  }
 0x11a   :  { %1677 = vst [vmem:[#allocation41] sm:$0xff] %v1676_v28   ;;  %v1389_v46 = vsel %vm167_vm0, %v1385_v39, %v2008_v2  ;;  %v1396_v47 = vsel %vm167_vm0, %v1392_v40, %v2008_v2  ;;  %v1403_v48 = vsel %vm167_vm0, %v1399_v41, %v2008_v2  ;;  %v1427_v49 = vunpack.c.h.bf16 %v1604_v33  ;;  %v1946_v9 = vld [vmem:[#allocation40 + $0x10] sm:$0xff]   ;;  %v1948_v15 = vld [vmem:[#allocation40 + $0x18] sm:$0xff]  }
 0x11b   :  { %1722 = vst [vmem:[#allocation40 + $0x8] sm:$0xff] %v1721_v38   ;;  %v1756_v50 = vpack.c.bf16 %v1389_v46, %v1382_v42  ;;  %v1761_v51 = vpack.c.bf16 %v1403_v48, %v1396_v47  ;;  %v1410_v52 = vsel %vm167_vm0, %v1406_v43, %v2008_v2  ;;  %v1417_v53 = vsel %vm167_vm0, %v1413_v44, %v2008_v2  ;;  %v1949_v11 = vld [vmem:[#allocation41 + $0x20] sm:$0xff]  }
 0x11c   :  { %v1766_v54 = vpack.c.bf16 %v1417_v53, %v1410_v52  ;;  %v1424_v55 = vsel %vm167_vm0, %v1420_v45, %v2008_v2  ;;  %v1431_v56 = vsel %vm167_vm0, %v1427_v49, %v2008_v2  ;;  %v1947_v2 = vld [vmem:[#allocation41 + $0x18] sm:$0xff]   ;;  %v1950_v12 = vld [vmem:[#allocation40 + $0x20] sm:$0xff]   ;;  %v1951_v13 = vld [vmem:[#allocation41 + $0x28] sm:$0xff]   ;;  %v1041_v20 = vpack.c.bf16 %v2081_v63, %v2079_v61 }
 0x11d   :  { %1757 = vst [vmem:[#allocation39] sm:$0xff] %v1756_v50   ;;  %1762 = vst [vmem:[#allocation39 + $0x8] sm:$0xff] %v1761_v51   ;;  %v1771_v57 = vpack.c.bf16 %v1431_v56, %v1424_v55  ;;  %v1952_v14 = vld [vmem:[#allocation40 + $0x28] sm:$0xff]   ;;  %v1953_v16 = vld [vmem:[#allocation41 + $0x30] sm:$0xff]   ;;  %v1042_v22 = vpack.c.bf16 %v2089_v8, %v2085_v5  ;;  %v1043_v23 = vpack.c.bf16 %v2087_v6, %v2083_v4 }
 0x11e   :  { %1767 = vst [vmem:[#allocation39 + $0x10] sm:$0xff] %v1766_v54   ;;  %v1954_v17 = vld [vmem:[#allocation40 + $0x30] sm:$0xff]   ;;  %v1955_v18 = vld [vmem:[#allocation41 + $0x38] sm:$0xff]   ;;  %v1553_v63 = vld [vmem:[%s2206_s5] sm:$0x1] }
 0x11f   :  { %1772 = vst [vmem:[#allocation39 + $0x18] sm:$0xff] %v1771_v57   ;;  %v1943_v60 = vld [vmem:[#allocation41 + $0x8] sm:$0xff]   ;;  %v1956_v19 = vld [vmem:[#allocation40 + $0x38] sm:$0xff]   ;;  %v1556_v4 = vsel %vm1555_vm2, %v1553_v63, %v37_v1 }
 0x120   :  { %v1942_v59 = vld [vmem:[#allocation40] sm:$0xff]   ;;  %1557 = vst [vmem:[#allocation42] sm:$0x1] %v1556_v4 }
 0x121   :  { %v1941_v58 = vld [vmem:[#allocation41] sm:$0xff]   ;;  %1880 = vmatprep.subr.bf16.mxu0 %v1942_v59 }
 0x122   :  { %1856 = vmatprep.subr.bf16.mxu1 %v1941_v58  ;;  %v1944_v62 = vld [vmem:[#allocation40 + $0x8] sm:$0xff]   ;;  %1881 = vmatpush3.bf16.msra.mxu0 %v1942_v59 }
 0x123   :  { %1857 = vmatpush3.bf16.msra.mxu1 %v1941_v58  ;;  %1882 = vmatprep.subr.bf16.mxu0 %v1944_v62 }
 0x124   :  { %1858 = vmatprep.subr.bf16.mxu1 %v1943_v60  ;;  %v1957_v10 = vld [vmem:[#allocation39] sm:$0xff]   ;;  %v1958_v21 = vld [vmem:[#allocation39 + $0x8] sm:$0xff]  }
 0x125   :  { %1896 = vmatprep.mubr.bf16.mxu0 %v1957_v10  ;;  %v1959_v7 = vld [vmem:[#allocation39 + $0x10] sm:$0xff]  }
 0x126   :  { %1883 = vmatpush3.bf16.msra.mxu0 %v1944_v62  ;;  %v1960_v61 = vld [vmem:[#allocation39 + $0x18] sm:$0xff]  }
 0x127   :  { %1859 = vmatpush3.bf16.msra.mxu1 %v1943_v60  ;;  %1884 = vmatprep.subr.bf16.mxu0 %v1946_v9  ;;  %v1626_v8 = vld [vmem:[#allocation42] ss:$0 sm:$0xff] }
 0x128   :  { %1860 = vmatprep.subr.bf16.mxu1 %v1945_v0 }
 0x12a   :  { %1885 = vmatpush3.bf16.msra.mxu0 %v1946_v9 }
 0x12b   :  { %1861 = vmatpush3.bf16.msra.mxu1 %v1945_v0  ;;  %1886 = vmatprep.subr.bf16.mxu0 %v1948_v15 }
 0x12c   :  { %1862 = vmatprep.subr.bf16.mxu1 %v1947_v2 }
 0x12e   :  { %1887 = vmatpush3.bf16.msra.mxu0 %v1948_v15 }
 0x12f   :  { %1863 = vmatpush3.bf16.msra.mxu1 %v1947_v2  ;;  %1888 = vmatprep.subr.bf16.mxu0 %v1950_v12 }
 0x130   :  { %1864 = vmatprep.subr.bf16.mxu1 %v1949_v11 }
 0x132   :  { %1889 = vmatpush3.bf16.msra.mxu0 %v1950_v12 }
 0x133   :  { %1865 = vmatpush3.bf16.msra.mxu1 %v1949_v11  ;;  %1890 = vmatprep.subr.bf16.mxu0 %v1952_v14 }
 0x134   :  { %1866 = vmatprep.subr.bf16.mxu1 %v1951_v13 }
 0x136   :  { %1891 = vmatpush3.bf16.msra.mxu0 %v1952_v14 }
 0x137   :  { %1867 = vmatpush3.bf16.msra.mxu1 %v1951_v13  ;;  %1892 = vmatprep.subr.bf16.mxu0 %v1954_v17 }
 0x138   :  { %1868 = vmatprep.subr.bf16.mxu1 %v1953_v16 }
 0x13a   :  { %1893 = vmatpush3.bf16.msra.mxu0 %v1954_v17 }
 0x13b   :  { %1869 = vmatpush3.bf16.msra.mxu1 %v1953_v16  ;;  %1894 = vmatprep.subr.bf16.mxu0 %v1956_v19 }
 0x13c   :  { %1870 = vmatprep.subr.bf16.mxu1 %v1955_v18 }
 0x13e   :  { %1895 = vmatpush3.bf16.msra.mxu0 %v1956_v19 }
 0x13f   :  { %1871 = vmatpush3.bf16.msra.mxu1 %v1955_v18 }
 0x140   :  { %1904 = vmatprep.subr.bf16.mxu1 %v1942_v59 }
 0x141   :  { %1897 = vmatmul.mubr.bf16.vlgmr.msra.gmra.mrb[8].mxu0 %v1958_v21 }
 0x142   :  { %1873 = vmatmul.mubr.bf16.vlgmr.msra.gmra.mrb[0].mxu1 %v1041_v20 }
 0x143   :  { %1912 = vmatpush3.bf16.msra.mxu1 %v1942_v59  ;;  %1876 = vmatprep.mubr.bf16.mxu1 %v1042_v22 }
 0x144   :  { %1905 = vmatprep.subr.bf16.mxu1 %v1944_v62 }
 0x147   :  { %1913 = vmatpush3.bf16.msra.mxu1 %v1944_v62 }
 0x148   :  { %1906 = vmatprep.subr.bf16.mxu1 %v1946_v9 }
 0x14a   :  { %1877 = vmatmul.mubr.bf16.gmra.mrb[4].mxu1 %v1043_v23 }
 0x14b   :  { %1914 = vmatpush3.bf16.msra.mxu1 %v1946_v9  ;;  %1900 = vmatprep.mubr.bf16.mxu1 %v1959_v7 }
 0x14c   :  { %1907 = vmatprep.subr.bf16.mxu1 %v1948_v15 }
 0x14f   :  { %1915 = vmatpush3.bf16.msra.mxu1 %v1948_v15 }
 0x150   :  { %1908 = vmatprep.subr.bf16.mxu1 %v1950_v12 }
 0x153   :  { %1916 = vmatpush3.bf16.msra.mxu1 %v1950_v12 }
 0x154   :  { %1909 = vmatprep.subr.bf16.mxu1 %v1952_v14 }
 0x157   :  { %1917 = vmatpush3.bf16.msra.mxu1 %v1952_v14 }
 0x158   :  { %1910 = vmatprep.subr.bf16.mxu1 %v1954_v17 }
 0x15b   :  { %1918 = vmatpush3.bf16.msra.mxu1 %v1954_v17 }
 0x15c   :  { %1911 = vmatprep.subr.bf16.mxu1 %v1956_v19 }
 0x15f   :  { %1919 = vmatpush3.bf16.msra.mxu1 %v1956_v19 }
 0x162   :  { %1901 = vmatmul.mubr.bf16.vlgmr.msra.gmra.mrb[4].mxu1 %v1960_v61 }
 0x214   :  { %v1898_v6 = vpop.f32.mrb[8].mxu0 }
 0x215   :  { %v1874_v5 = vpop.f32.mrb[0].mxu1  ;;  %v1279_v26 = vpop.f32.mrb[9].mxu0 }
 0x216   :  { %v1142_v24 = vpop.f32.mrb[1].mxu1  ;;  %v1288_v25 = vadd.f32 %v1898_v6, %v1874_v5  ;;  %v1899_v29 = vpop.f32.mrb[10].mxu0 }
 0x217   :  { %v1875_v27 = vpop.f32.mrb[2].mxu1  ;;  %v1280_v28 = vadd.f32 %v1279_v26, %v1142_v24  ;;  %v1282_v33 = vpop.f32.mrb[11].mxu0 }
 0x218   :  { %v1145_v30 = vpop.f32.mrb[3].mxu1  ;;  %v1319_v31 = vadd.f32 %v1626_v8, %v1288_v25  ;;  %v1291_v32 = vadd.f32 %v1899_v29, %v1875_v27 }
 0x219   :  { %v1317_v3 = vadd.f32 %v1626_v8, %v1280_v28  ;;  %v1283_v34 = vadd.f32 %v1282_v33, %v1145_v30 }
 0x21a   :  { %v1327_v35 = vmax.f32 %v1319_v31, 0.0  ;;  %v1320_v36 = vadd.f32 %v1626_v8, %v1291_v32 }
 0x21b   :  { %v1318_v37 = vadd.f32 %v1626_v8, %v1283_v34  ;;  %v1325_v38 = vmax.f32 %v1317_v3, 0.0 }
 0x21c   :  { %v1328_v1 = vmax.f32 %v1320_v36, 0.0 }
 0x21d   :  { %v1326_v39 = vmax.f32 %v1318_v37, 0.0 }
 0x21e   :  { %v1781_v40 = vpack.c.bf16 %v1328_v1, %v1327_v35 }
 0x21f   :  { %v1776_v41 = vpack.c.bf16 %v1326_v39, %v1325_v38 }
 0x220   :  { %1793 = vst [vmem:[%s2208_s7 + $0x8] sm:$0xff] %v1781_v40  }
 0x221   :  { %1777 = vst [vmem:[%s2208_s7] sm:$0xff] %v1776_v41  }
 0x235   :  { %v1902_v42 = vpop.f32.mrb[4].mxu1 }
 0x236   :  { %v1323_v43 = vadd.f32 %v1902_v42, %v1626_v8  ;;  %v1295_v44 = vpop.f32.mrb[5].mxu1 }
 0x237   :  { %v1321_v45 = vadd.f32 %v1626_v8, %v1295_v44  ;;  %v1903_v46 = vpop.f32.mrb[6].mxu1 }
 0x238   :  { %v1324_v47 = vadd.f32 %v1903_v46, %v1626_v8  ;;  %v1298_v48 = vpop.f32.mrb[7].mxu1  ;;  %v1331_v50 = vmax.f32 %v1323_v43, 0.0 }
 0x239   :  { %v1322_v49 = vadd.f32 %v1626_v8, %v1298_v48  ;;  %v1329_v52 = vmax.f32 %v1321_v45, 0.0 }
 0x23a   :  { %v1332_v51 = vmax.f32 %v1324_v47, 0.0 }
 0x23b   :  { %v1330_v53 = vmax.f32 %v1322_v49, 0.0 }
 0x23c   :  { %v1791_v54 = vpack.c.bf16 %v1332_v51, %v1331_v50 }
 0x23d   :  { %v1786_v55 = vpack.c.bf16 %v1330_v53, %v1329_v52 }
 0x23e   :  { %1795 = vst [vmem:[%s2208_s7 + $0x18] sm:$0xff] %v1791_v54  }
 0x23f   :  { %1794 = vst [vmem:[%s2208_s7 + $0x10] sm:$0xff] %v1786_v55  }

</bundles_post_ra>
